<compile_context>
chip_gen: v7x
topology: tpu7x:2x2x1
jax: 0.10.0
libtpu: 0.0.40
codegen_flags: <defaults>
</compile_context>

<pallas_src>
import functools

import jax
import jax.numpy as jnp
from jax.experimental import pallas as pl
from jax.experimental.pallas import tpu as pltpu


# ----------------------------- config (synthetic) -----------------------------
S = 4            # grid size
B = 2            # boxes per cell
C = 4            # classes
IMAGE_SIZE = 64  # canvas size in pixels
L_COORD = 5.0
L_NOOBJ = 0.5


# --------------------------------- kernel ------------------------------------
def _yolo_loss_kernel(out_ref, tgt_ref, part_ref, *,
                      S, B, C, L_coord, L_noobj, canvas, n_cells, tile_rows):
    f32 = jnp.float32
    cell_size = float(canvas) / float(S)

    # ---- per-cell indices / validity, computed in-kernel (no aux input) ----
    tile_cells = tile_rows * 128
    tile_start = pl.program_id(0) * tile_cells
    row_i = jax.lax.broadcasted_iota(jnp.int32, (tile_rows, 128), 0)
    lane_i = jax.lax.broadcasted_iota(jnp.int32, (tile_rows, 128), 1)
    gidx = tile_start + row_i * 128 + lane_i              # global flat cell id
    valid = (gidx < n_cells).astype(f32)                  # 0 for padding cells
    if (S & (S - 1)) == 0:                                # power-of-two fast path
        log2s = S.bit_length() - 1
        cell_col = (gidx & (S - 1)).astype(f32)
        cell_row = ((gidx >> log2s) & (S - 1)).astype(f32)
    else:
        cell_col = (gidx % S).astype(f32)
        cell_row = ((gidx // S) % S).astype(f32)

    # ---- target fields: each a dense (tile_rows, 128) tile ----
    t_conf = tgt_ref[C + 0]
    t_cx = tgt_ref[C + 1]
    t_cy = tgt_ref[C + 2]
    t_w = tgt_ref[C + 3]
    t_h = tgt_ref[C + 4]

    def to_corners(cx, cy, w, h):
        # cx, cy are offsets within the cell (0..1); w, h relative to canvas.
        x = (cell_col + cx) * cell_size
        y = (cell_row + cy) * cell_size
        wa = w * float(canvas)
        ha = h * float(canvas)
        return x - wa * 0.5, y - ha * 0.5, x + wa * 0.5, y + ha * 0.5

    tx1, ty1, tx2, ty2 = to_corners(t_cx, t_cy, t_w, t_h)
    t_area = jnp.maximum(tx2 - tx1, 0.0) * jnp.maximum(ty2 - ty1, 0.0)

    def box_fields(bi):
        base = C + 5 * bi
        return (out_ref[base + 0], out_ref[base + 1], out_ref[base + 2],
                out_ref[base + 3], out_ref[base + 4])

    def inter_union(cx, cy, w, h):
        px1, py1, px2, py2 = to_corners(cx, cy, w, h)
        ix1 = jnp.maximum(px1, tx1)
        iy1 = jnp.maximum(py1, ty1)
        ix2 = jnp.minimum(px2, tx2)
        iy2 = jnp.minimum(py2, ty2)
        inter = jnp.maximum(ix2 - ix1, 0.0) * jnp.maximum(iy2 - iy1, 0.0)
        p_area = jnp.maximum(px2 - px1, 0.0) * jnp.maximum(py2 - py1, 0.0)
        union = jnp.maximum(p_area + t_area - inter, 1e-10)
        return inter, union

    # TODO(synk): external `yolo_resp_bbox` source unavailable; implementing the
    # standard YOLOv1 "responsible box = argmax IoU with target" selection
    # (first-max wins on ties, matching torch argmax tie-breaking).
    # Divide-free: iou_b > iou_best  <=>  inter_b*union_best > inter_best*union_b
    # (exact, since both unions are clamped positive).
    r_conf, r_cx, r_cy, r_w, r_h = box_fields(0)
    best_inter, best_union = inter_union(r_cx, r_cy, r_w, r_h)
    for bi in range(1, B):
        c_b, x_b, y_b, w_b, h_b = box_fields(bi)
        inter_b, union_b = inter_union(x_b, y_b, w_b, h_b)
        take = inter_b * best_union > best_inter * union_b
        best_inter = jnp.where(take, inter_b, best_inter)
        best_union = jnp.where(take, union_b, best_union)
        r_conf = jnp.where(take, c_b, r_conf)
        r_cx = jnp.where(take, x_b, r_cx)
        r_cy = jnp.where(take, y_b, r_cy)
        r_w = jnp.where(take, w_b, r_w)
        r_h = jnp.where(take, h_b, r_h)

    # ---- masks (exact 0/1 semantics as in the PyTorch reference) ----
    obj = (t_conf == 1.0).astype(f32) * valid
    noobj = (t_conf == 0.0).astype(f32) * valid

    # ---- fused per-cell loss map ----
    # coords: reference compares raw target w/h against sqrt(pred^2) == |pred|
    coord_sq = ((t_cx - r_cx) ** 2 + (t_cy - r_cy) ** 2
                + (t_w - jnp.abs(r_w)) ** 2 + (t_h - jnp.abs(r_h)) ** 2)
    conf_sq = (r_conf - t_conf) ** 2
    cls_sq = (out_ref[0] - tgt_ref[0]) ** 2
    for c in range(1, C):
        cls_sq = cls_sq + (out_ref[c] - tgt_ref[c]) ** 2

    conf_w = obj + f32(L_noobj) * noobj          # single weight for the conf term
    per_cell = conf_w * conf_sq + obj * (f32(L_coord) * coord_sq + cls_sq)

    # ---- per-tile partial sum as an (8, 128) slab (tree of VPU adds over
    #      8-row slabs; slices are on vreg-tile boundaries -> free) ----
    blocks = [per_cell[8 * k:8 * (k + 1), :] for k in range(tile_rows // 8)]
    while len(blocks) > 1:
        nxt = [a + b for a, b in zip(blocks[0::2], blocks[1::2])]
        if len(blocks) % 2:
            nxt.append(blocks[-1])
        blocks = nxt
    part_ref[0] = blocks[0]


# -------------------------------- wrapper -------------------------------------
def yolo_loss(output, target, *, S=S, B=B, C=C,
              L_coord=L_COORD, L_noobj=L_NOOBJ, image_size=IMAGE_SIZE,
              tile_rows=None):
    """output: (batch, S, S, B*5 + C); target: (batch, S, S, 5 + C) -> scalar."""
    batch = output.shape[0]
    f_out = B * 5 + C
    f_tgt = 5 + C
    n_cells = batch * S * S

    # choose a cell tile: tile_rows sublanes x 128 lanes of cells per grid step
    rows_needed = -(-n_cells // 128)
    if tile_rows is None:
        # big tiles amortize the ~0.35 us/step overhead; 128 rows keeps the
        # double-buffered input slabs + temporaries well under VMEM limits.
        tile_rows = max(8, min(128, ((rows_needed + 7) // 8) * 8))
    tile_cells = tile_rows * 128
    num_tiles = -(-n_cells // tile_cells)
    n_pad = num_tiles * tile_cells

    # cells-dense layout: (F, n_pad // 128, 128) slabs, f32.
    # TODO(synk): for very large batches, fuse this transpose/pad into the
    # producing op to avoid an extra HBM pass over the activations.
    out_flat = output.reshape(n_cells, f_out).T.astype(jnp.float32)
    tgt_flat = target.reshape(n_cells, f_tgt).T.astype(jnp.float32)
    pad = n_pad - n_cells
    out_p = jnp.pad(out_flat, ((0, 0), (0, pad))).reshape(f_out, n_pad // 128, 128)
    tgt_p = jnp.pad(tgt_flat, ((0, 0), (0, pad))).reshape(f_tgt, n_pad // 128, 128)

    kernel = functools.partial(
        _yolo_loss_kernel,
        S=S, B=B, C=C, L_coord=float(L_coord), L_noobj=float(L_noobj),
        canvas=float(image_size), n_cells=n_cells, tile_rows=tile_rows)

    # VMEM budget: double-buffered input slabs + temporaries, with headroom.
    per_step_bytes = (f_out + f_tgt) * tile_cells * 4
    vmem_limit = int(min(48 * 2**20, max(16 * 2**20, 6 * per_step_bytes)))

    partials = pl.pallas_call(
        kernel,
        out_shape=jax.ShapeDtypeStruct((num_tiles, 8, 128), jnp.float32),
        grid=(num_tiles,),
        in_specs=[
            pl.BlockSpec((f_out, tile_rows, 128), lambda i: (0, i, 0)),
            pl.BlockSpec((f_tgt, tile_rows, 128), lambda i: (0, i, 0)),
        ],
        out_specs=pl.BlockSpec((1, 8, 128), lambda i: (i, 0, 0)),
        compiler_params=pltpu.CompilerParams(
            dimension_semantics=("parallel",),
            vmem_limit_bytes=vmem_limit),
    )(out_p, tgt_p)

    return jnp.sum(partials) / jnp.float32(batch)


# --------------------------------- main ---------------------------------------
if __name__ == "__main__":
    key = jax.random.PRNGKey(0)
    k1, k2, k3, k4, k5 = jax.random.split(key, 5)

    batch = 2
    # predictions: classes + B boxes of (conf, cx, cy, w, h), all in (0, 1)
    output = jax.random.uniform(k1, (batch, S, S, B * 5 + C), jnp.float32)

    # targets: class scores in [0,1], conf exactly 0/1, coords in (0,1)
    tgt_cls = jax.random.uniform(k2, (batch, S, S, C), jnp.float32)
    tgt_conf = jax.random.bernoulli(k3, 0.4, (batch, S, S, 1)).astype(jnp.float32)
    tgt_cxy = jax.random.uniform(k4, (batch, S, S, 2), jnp.float32)
    tgt_wh = jax.random.uniform(k5, (batch, S, S, 2), jnp.float32,
                                minval=0.05, maxval=0.5)
    target = jnp.concatenate([tgt_cls, tgt_conf, tgt_cxy, tgt_wh], axis=-1)

    loss = yolo_loss(output, target)
    jax.block_until_ready(loss)
    print("KERNEL_OK")
</pallas_src>

<mosaic_0001>
module attributes {stable_mosaic.version = 11 : i64} {
  func.func @_yolo_loss_kernel(%arg0: i32, %arg1: memref<14x8x128xf32, #tpu.memory_space<vmem>>, %arg2: memref<9x8x128xf32, #tpu.memory_space<vmem>>, %arg3: memref<1x8x128xf32, #tpu.memory_space<vmem>>) attributes {dimension_semantics = [#tpu.dimension_semantics<parallel>], iteration_bounds = array<i64: 1>, scalar_prefetch = 0 : i64, scratch_operands = 0 : i64, tpu.core_type = #tpu.core_type<tc>, window_params = [{transform_indices = @transform_0, window_bounds = array<i64: 14, 8, 128>}, {transform_indices = @transform_1, window_bounds = array<i64: 9, 8, 128>}, {transform_indices = @transform_2, window_bounds = array<i64: 1, 8, 128>}]} {
    %c1024_i32 = arith.constant 1024 : i32
    %0 = arith.muli %arg0, %c1024_i32 : i32
    %1 = tpu.iota {dimensions = array<i32: 0>} : vector<8x128xi32>
    %2 = tpu.iota {dimensions = array<i32: 1>} : vector<8x128xi32>
    %c128_i32 = arith.constant 128 : i32
    %3 = vector.broadcast %c128_i32 : i32 to vector<8x128xi32>
    %4 = arith.muli %1, %3 : vector<8x128xi32>
    %5 = vector.broadcast %0 : i32 to vector<8x128xi32>
    %6 = arith.addi %5, %4 : vector<8x128xi32>
    %7 = arith.addi %6, %2 : vector<8x128xi32>
    %c32_i32 = arith.constant 32 : i32
    %8 = vector.broadcast %c32_i32 : i32 to vector<8x128xi32>
    %9 = arith.cmpi slt, %7, %8 : vector<8x128xi32>
    %10 = arith.extui %9 : vector<8x128xi1> to vector<8x128xi32>
    %11 = arith.sitofp %10 : vector<8x128xi32> to vector<8x128xf32>
    %c3_i32 = arith.constant 3 : i32
    %12 = vector.broadcast %c3_i32 : i32 to vector<8x128xi32>
    %13 = arith.andi %7, %12 : vector<8x128xi32>
    %14 = arith.sitofp %13 : vector<8x128xi32> to vector<8x128xf32>
    %c2_i32 = arith.constant 2 : i32
    %15 = vector.broadcast %c2_i32 : i32 to vector<8x128xi32>
    %16 = arith.shrsi %7, %15 : vector<8x128xi32>
    %c3_i32_0 = arith.constant 3 : i32
    %17 = vector.broadcast %c3_i32_0 : i32 to vector<8x128xi32>
    %18 = arith.andi %16, %17 : vector<8x128xi32>
    %19 = arith.sitofp %18 : vector<8x128xi32> to vector<8x128xf32>
    %c4 = arith.constant 4 : index
    %c0 = arith.constant 0 : index
    %c0_1 = arith.constant 0 : index
    %20 = vector.load %arg2[%c4, %c0, %c0_1] : memref<9x8x128xf32, #tpu.memory_space<vmem>>, vector<1x8x128xf32>
    %21 = vector.shape_cast %20 : vector<1x8x128xf32> to vector<8x128xf32>
    %c5 = arith.constant 5 : index
    %c0_2 = arith.constant 0 : index
    %c0_3 = arith.constant 0 : index
    %22 = vector.load %arg2[%c5, %c0_2, %c0_3] : memref<9x8x128xf32, #tpu.memory_space<vmem>>, vector<1x8x128xf32>
    %23 = vector.shape_cast %22 : vector<1x8x128xf32> to vector<8x128xf32>
    %c6 = arith.constant 6 : index
    %c0_4 = arith.constant 0 : index
    %c0_5 = arith.constant 0 : index
    %24 = vector.load %arg2[%c6, %c0_4, %c0_5] : memref<9x8x128xf32, #tpu.memory_space<vmem>>, vector<1x8x128xf32>
    %25 = vector.shape_cast %24 : vector<1x8x128xf32> to vector<8x128xf32>
    %c7 = arith.constant 7 : index
    %c0_6 = arith.constant 0 : index
    %c0_7 = arith.constant 0 : index
    %26 = vector.load %arg2[%c7, %c0_6, %c0_7] : memref<9x8x128xf32, #tpu.memory_space<vmem>>, vector<1x8x128xf32>
    %27 = vector.shape_cast %26 : vector<1x8x128xf32> to vector<8x128xf32>
    %c8 = arith.constant 8 : index
    %c0_8 = arith.constant 0 : index
    %c0_9 = arith.constant 0 : index
    %28 = vector.load %arg2[%c8, %c0_8, %c0_9] : memref<9x8x128xf32, #tpu.memory_space<vmem>>, vector<1x8x128xf32>
    %29 = vector.shape_cast %28 : vector<1x8x128xf32> to vector<8x128xf32>
    %30 = arith.addf %14, %23 : vector<8x128xf32>
    %cst = arith.constant 1.600000e+01 : f32
    %31 = vector.broadcast %cst : f32 to vector<8x128xf32>
    %32 = arith.mulf %30, %31 : vector<8x128xf32>
    %33 = arith.addf %19, %25 : vector<8x128xf32>
    %cst_10 = arith.constant 1.600000e+01 : f32
    %34 = vector.broadcast %cst_10 : f32 to vector<8x128xf32>
    %35 = arith.mulf %33, %34 : vector<8x128xf32>
    %cst_11 = arith.constant 6.400000e+01 : f32
    %36 = vector.broadcast %cst_11 : f32 to vector<8x128xf32>
    %37 = arith.mulf %27, %36 : vector<8x128xf32>
    %cst_12 = arith.constant 6.400000e+01 : f32
    %38 = vector.broadcast %cst_12 : f32 to vector<8x128xf32>
    %39 = arith.mulf %29, %38 : vector<8x128xf32>
    %cst_13 = arith.constant 5.000000e-01 : f32
    %40 = vector.broadcast %cst_13 : f32 to vector<8x128xf32>
    %41 = arith.mulf %37, %40 : vector<8x128xf32>
    %42 = arith.subf %32, %41 : vector<8x128xf32>
    %cst_14 = arith.constant 5.000000e-01 : f32
    %43 = vector.broadcast %cst_14 : f32 to vector<8x128xf32>
    %44 = arith.mulf %39, %43 : vector<8x128xf32>
    %45 = arith.subf %35, %44 : vector<8x128xf32>
    %cst_15 = arith.constant 5.000000e-01 : f32
    %46 = vector.broadcast %cst_15 : f32 to vector<8x128xf32>
    %47 = arith.mulf %37, %46 : vector<8x128xf32>
    %48 = arith.addf %32, %47 : vector<8x128xf32>
    %cst_16 = arith.constant 5.000000e-01 : f32
    %49 = vector.broadcast %cst_16 : f32 to vector<8x128xf32>
    %50 = arith.mulf %39, %49 : vector<8x128xf32>
    %51 = arith.addf %35, %50 : vector<8x128xf32>
    %52 = arith.subf %48, %42 : vector<8x128xf32>
    %cst_17 = arith.constant 0.000000e+00 : f32
    %53 = vector.broadcast %cst_17 : f32 to vector<8x128xf32>
    %54 = arith.maximumf %52, %53 : vector<8x128xf32>
    %55 = arith.subf %51, %45 : vector<8x128xf32>
    %cst_18 = arith.constant 0.000000e+00 : f32
    %56 = vector.broadcast %cst_18 : f32 to vector<8x128xf32>
    %57 = arith.maximumf %55, %56 : vector<8x128xf32>
    %58 = arith.mulf %54, %57 : vector<8x128xf32>
    %c4_19 = arith.constant 4 : index
    %c0_20 = arith.constant 0 : index
    %c0_21 = arith.constant 0 : index
    %59 = vector.load %arg1[%c4_19, %c0_20, %c0_21] : memref<14x8x128xf32, #tpu.memory_space<vmem>>, vector<1x8x128xf32>
    %60 = vector.shape_cast %59 : vector<1x8x128xf32> to vector<8x128xf32>
    %c5_22 = arith.constant 5 : index
    %c0_23 = arith.constant 0 : index
    %c0_24 = arith.constant 0 : index
    %61 = vector.load %arg1[%c5_22, %c0_23, %c0_24] : memref<14x8x128xf32, #tpu.memory_space<vmem>>, vector<1x8x128xf32>
    %62 = vector.shape_cast %61 : vector<1x8x128xf32> to vector<8x128xf32>
    %c6_25 = arith.constant 6 : index
    %c0_26 = arith.constant 0 : index
    %c0_27 = arith.constant 0 : index
    %63 = vector.load %arg1[%c6_25, %c0_26, %c0_27] : memref<14x8x128xf32, #tpu.memory_space<vmem>>, vector<1x8x128xf32>
    %64 = vector.shape_cast %63 : vector<1x8x128xf32> to vector<8x128xf32>
    %c7_28 = arith.constant 7 : index
    %c0_29 = arith.constant 0 : index
    %c0_30 = arith.constant 0 : index
    %65 = vector.load %arg1[%c7_28, %c0_29, %c0_30] : memref<14x8x128xf32, #tpu.memory_space<vmem>>, vector<1x8x128xf32>
    %66 = vector.shape_cast %65 : vector<1x8x128xf32> to vector<8x128xf32>
    %c8_31 = arith.constant 8 : index
    %c0_32 = arith.constant 0 : index
    %c0_33 = arith.constant 0 : index
    %67 = vector.load %arg1[%c8_31, %c0_32, %c0_33] : memref<14x8x128xf32, #tpu.memory_space<vmem>>, vector<1x8x128xf32>
    %68 = vector.shape_cast %67 : vector<1x8x128xf32> to vector<8x128xf32>
    %69 = arith.addf %14, %62 : vector<8x128xf32>
    %cst_34 = arith.constant 1.600000e+01 : f32
    %70 = vector.broadcast %cst_34 : f32 to vector<8x128xf32>
    %71 = arith.mulf %69, %70 : vector<8x128xf32>
    %72 = arith.addf %19, %64 : vector<8x128xf32>
    %cst_35 = arith.constant 1.600000e+01 : f32
    %73 = vector.broadcast %cst_35 : f32 to vector<8x128xf32>
    %74 = arith.mulf %72, %73 : vector<8x128xf32>
    %cst_36 = arith.constant 6.400000e+01 : f32
    %75 = vector.broadcast %cst_36 : f32 to vector<8x128xf32>
    %76 = arith.mulf %66, %75 : vector<8x128xf32>
    %cst_37 = arith.constant 6.400000e+01 : f32
    %77 = vector.broadcast %cst_37 : f32 to vector<8x128xf32>
    %78 = arith.mulf %68, %77 : vector<8x128xf32>
    %cst_38 = arith.constant 5.000000e-01 : f32
    %79 = vector.broadcast %cst_38 : f32 to vector<8x128xf32>
    %80 = arith.mulf %76, %79 : vector<8x128xf32>
    %81 = arith.subf %71, %80 : vector<8x128xf32>
    %cst_39 = arith.constant 5.000000e-01 : f32
    %82 = vector.broadcast %cst_39 : f32 to vector<8x128xf32>
    %83 = arith.mulf %78, %82 : vector<8x128xf32>
    %84 = arith.subf %74, %83 : vector<8x128xf32>
    %cst_40 = arith.constant 5.000000e-01 : f32
    %85 = vector.broadcast %cst_40 : f32 to vector<8x128xf32>
    %86 = arith.mulf %76, %85 : vector<8x128xf32>
    %87 = arith.addf %71, %86 : vector<8x128xf32>
    %cst_41 = arith.constant 5.000000e-01 : f32
    %88 = vector.broadcast %cst_41 : f32 to vector<8x128xf32>
    %89 = arith.mulf %78, %88 : vector<8x128xf32>
    %90 = arith.addf %74, %89 : vector<8x128xf32>
    %91 = arith.maximumf %81, %42 : vector<8x128xf32>
    %92 = arith.maximumf %84, %45 : vector<8x128xf32>
    %93 = arith.minimumf %87, %48 : vector<8x128xf32>
    %94 = arith.minimumf %90, %51 : vector<8x128xf32>
    %95 = arith.subf %93, %91 : vector<8x128xf32>
    %cst_42 = arith.constant 0.000000e+00 : f32
    %96 = vector.broadcast %cst_42 : f32 to vector<8x128xf32>
    %97 = arith.maximumf %95, %96 : vector<8x128xf32>
    %98 = arith.subf %94, %92 : vector<8x128xf32>
    %cst_43 = arith.constant 0.000000e+00 : f32
    %99 = vector.broadcast %cst_43 : f32 to vector<8x128xf32>
    %100 = arith.maximumf %98, %99 : vector<8x128xf32>
    %101 = arith.mulf %97, %100 : vector<8x128xf32>
    %102 = arith.subf %87, %81 : vector<8x128xf32>
    %cst_44 = arith.constant 0.000000e+00 : f32
    %103 = vector.broadcast %cst_44 : f32 to vector<8x128xf32>
    %104 = arith.maximumf %102, %103 : vector<8x128xf32>
    %105 = arith.subf %90, %84 : vector<8x128xf32>
    %cst_45 = arith.constant 0.000000e+00 : f32
    %106 = vector.broadcast %cst_45 : f32 to vector<8x128xf32>
    %107 = arith.maximumf %105, %106 : vector<8x128xf32>
    %108 = arith.mulf %104, %107 : vector<8x128xf32>
    %109 = arith.addf %108, %58 : vector<8x128xf32>
    %110 = arith.subf %109, %101 : vector<8x128xf32>
    %cst_46 = arith.constant 1.000000e-10 : f32
    %111 = vector.broadcast %cst_46 : f32 to vector<8x128xf32>
    %112 = arith.maximumf %110, %111 : vector<8x128xf32>
    %c9 = arith.constant 9 : index
    %c0_47 = arith.constant 0 : index
    %c0_48 = arith.constant 0 : index
    %113 = vector.load %arg1[%c9, %c0_47, %c0_48] : memref<14x8x128xf32, #tpu.memory_space<vmem>>, vector<1x8x128xf32>
    %114 = vector.shape_cast %113 : vector<1x8x128xf32> to vector<8x128xf32>
    %c10 = arith.constant 10 : index
    %c0_49 = arith.constant 0 : index
    %c0_50 = arith.constant 0 : index
    %115 = vector.load %arg1[%c10, %c0_49, %c0_50] : memref<14x8x128xf32, #tpu.memory_space<vmem>>, vector<1x8x128xf32>
    %116 = vector.shape_cast %115 : vector<1x8x128xf32> to vector<8x128xf32>
    %c11 = arith.constant 11 : index
    %c0_51 = arith.constant 0 : index
    %c0_52 = arith.constant 0 : index
    %117 = vector.load %arg1[%c11, %c0_51, %c0_52] : memref<14x8x128xf32, #tpu.memory_space<vmem>>, vector<1x8x128xf32>
    %118 = vector.shape_cast %117 : vector<1x8x128xf32> to vector<8x128xf32>
    %c12 = arith.constant 12 : index
    %c0_53 = arith.constant 0 : index
    %c0_54 = arith.constant 0 : index
    %119 = vector.load %arg1[%c12, %c0_53, %c0_54] : memref<14x8x128xf32, #tpu.memory_space<vmem>>, vector<1x8x128xf32>
    %120 = vector.shape_cast %119 : vector<1x8x128xf32> to vector<8x128xf32>
    %c13 = arith.constant 13 : index
    %c0_55 = arith.constant 0 : index
    %c0_56 = arith.constant 0 : index
    %121 = vector.load %arg1[%c13, %c0_55, %c0_56] : memref<14x8x128xf32, #tpu.memory_space<vmem>>, vector<1x8x128xf32>
    %122 = vector.shape_cast %121 : vector<1x8x128xf32> to vector<8x128xf32>
    %123 = arith.addf %14, %116 : vector<8x128xf32>
    %cst_57 = arith.constant 1.600000e+01 : f32
    %124 = vector.broadcast %cst_57 : f32 to vector<8x128xf32>
    %125 = arith.mulf %123, %124 : vector<8x128xf32>
    %126 = arith.addf %19, %118 : vector<8x128xf32>
    %cst_58 = arith.constant 1.600000e+01 : f32
    %127 = vector.broadcast %cst_58 : f32 to vector<8x128xf32>
    %128 = arith.mulf %126, %127 : vector<8x128xf32>
    %cst_59 = arith.constant 6.400000e+01 : f32
    %129 = vector.broadcast %cst_59 : f32 to vector<8x128xf32>
    %130 = arith.mulf %120, %129 : vector<8x128xf32>
    %cst_60 = arith.constant 6.400000e+01 : f32
    %131 = vector.broadcast %cst_60 : f32 to vector<8x128xf32>
    %132 = arith.mulf %122, %131 : vector<8x128xf32>
    %cst_61 = arith.constant 5.000000e-01 : f32
    %133 = vector.broadcast %cst_61 : f32 to vector<8x128xf32>
    %134 = arith.mulf %130, %133 : vector<8x128xf32>
    %135 = arith.subf %125, %134 : vector<8x128xf32>
    %cst_62 = arith.constant 5.000000e-01 : f32
    %136 = vector.broadcast %cst_62 : f32 to vector<8x128xf32>
    %137 = arith.mulf %132, %136 : vector<8x128xf32>
    %138 = arith.subf %128, %137 : vector<8x128xf32>
    %cst_63 = arith.constant 5.000000e-01 : f32
    %139 = vector.broadcast %cst_63 : f32 to vector<8x128xf32>
    %140 = arith.mulf %130, %139 : vector<8x128xf32>
    %141 = arith.addf %125, %140 : vector<8x128xf32>
    %cst_64 = arith.constant 5.000000e-01 : f32
    %142 = vector.broadcast %cst_64 : f32 to vector<8x128xf32>
    %143 = arith.mulf %132, %142 : vector<8x128xf32>
    %144 = arith.addf %128, %143 : vector<8x128xf32>
    %145 = arith.maximumf %135, %42 : vector<8x128xf32>
    %146 = arith.maximumf %138, %45 : vector<8x128xf32>
    %147 = arith.minimumf %141, %48 : vector<8x128xf32>
    %148 = arith.minimumf %144, %51 : vector<8x128xf32>
    %149 = arith.subf %147, %145 : vector<8x128xf32>
    %cst_65 = arith.constant 0.000000e+00 : f32
    %150 = vector.broadcast %cst_65 : f32 to vector<8x128xf32>
    %151 = arith.maximumf %149, %150 : vector<8x128xf32>
    %152 = arith.subf %148, %146 : vector<8x128xf32>
    %cst_66 = arith.constant 0.000000e+00 : f32
    %153 = vector.broadcast %cst_66 : f32 to vector<8x128xf32>
    %154 = arith.maximumf %152, %153 : vector<8x128xf32>
    %155 = arith.mulf %151, %154 : vector<8x128xf32>
    %156 = arith.subf %141, %135 : vector<8x128xf32>
    %cst_67 = arith.constant 0.000000e+00 : f32
    %157 = vector.broadcast %cst_67 : f32 to vector<8x128xf32>
    %158 = arith.maximumf %156, %157 : vector<8x128xf32>
    %159 = arith.subf %144, %138 : vector<8x128xf32>
    %cst_68 = arith.constant 0.000000e+00 : f32
    %160 = vector.broadcast %cst_68 : f32 to vector<8x128xf32>
    %161 = arith.maximumf %159, %160 : vector<8x128xf32>
    %162 = arith.mulf %158, %161 : vector<8x128xf32>
    %163 = arith.addf %162, %58 : vector<8x128xf32>
    %164 = arith.subf %163, %155 : vector<8x128xf32>
    %cst_69 = arith.constant 1.000000e-10 : f32
    %165 = vector.broadcast %cst_69 : f32 to vector<8x128xf32>
    %166 = arith.maximumf %164, %165 : vector<8x128xf32>
    %167 = arith.mulf %155, %112 : vector<8x128xf32>
    %168 = arith.mulf %101, %166 : vector<8x128xf32>
    %169 = arith.cmpf ogt, %167, %168 : vector<8x128xf32>
    %170 = arith.select %169, %114, %60 : vector<8x128xi1>, vector<8x128xf32>
    %171 = arith.select %169, %116, %62 : vector<8x128xi1>, vector<8x128xf32>
    %172 = arith.select %169, %118, %64 : vector<8x128xi1>, vector<8x128xf32>
    %173 = arith.select %169, %120, %66 : vector<8x128xi1>, vector<8x128xf32>
    %174 = arith.select %169, %122, %68 : vector<8x128xi1>, vector<8x128xf32>
    %cst_70 = arith.constant 1.000000e+00 : f32
    %175 = vector.broadcast %cst_70 : f32 to vector<8x128xf32>
    %176 = arith.cmpf oeq, %21, %175 : vector<8x128xf32>
    %177 = arith.extui %176 : vector<8x128xi1> to vector<8x128xi32>
    %178 = arith.sitofp %177 : vector<8x128xi32> to vector<8x128xf32>
    %179 = arith.mulf %178, %11 : vector<8x128xf32>
    %cst_71 = arith.constant 0.000000e+00 : f32
    %180 = vector.broadcast %cst_71 : f32 to vector<8x128xf32>
    %181 = arith.cmpf oeq, %21, %180 : vector<8x128xf32>
    %182 = arith.extui %181 : vector<8x128xi1> to vector<8x128xi32>
    %183 = arith.sitofp %182 : vector<8x128xi32> to vector<8x128xf32>
    %184 = arith.mulf %183, %11 : vector<8x128xf32>
    %185 = arith.subf %23, %171 : vector<8x128xf32>
    %186 = arith.mulf %185, %185 : vector<8x128xf32>
    %187 = arith.subf %25, %172 : vector<8x128xf32>
    %188 = arith.mulf %187, %187 : vector<8x128xf32>
    %189 = arith.addf %186, %188 : vector<8x128xf32>
    %190 = math.absf %173 : vector<8x128xf32>
    %191 = arith.subf %27, %190 : vector<8x128xf32>
    %192 = arith.mulf %191, %191 : vector<8x128xf32>
    %193 = arith.addf %189, %192 : vector<8x128xf32>
    %194 = math.absf %174 : vector<8x128xf32>
    %195 = arith.subf %29, %194 : vector<8x128xf32>
    %196 = arith.mulf %195, %195 : vector<8x128xf32>
    %197 = arith.addf %193, %196 : vector<8x128xf32>
    %198 = arith.subf %170, %21 : vector<8x128xf32>
    %199 = arith.mulf %198, %198 : vector<8x128xf32>
    %c0_72 = arith.constant 0 : index
    %c0_73 = arith.constant 0 : index
    %c0_74 = arith.constant 0 : index
    %200 = vector.load %arg1[%c0_72, %c0_73, %c0_74] : memref<14x8x128xf32, #tpu.memory_space<vmem>>, vector<1x8x128xf32>
    %201 = vector.shape_cast %200 : vector<1x8x128xf32> to vector<8x128xf32>
    %c0_75 = arith.constant 0 : index
    %c0_76 = arith.constant 0 : index
    %c0_77 = arith.constant 0 : index
    %202 = vector.load %arg2[%c0_75, %c0_76, %c0_77] : memref<9x8x128xf32, #tpu.memory_space<vmem>>, vector<1x8x128xf32>
    %203 = vector.shape_cast %202 : vector<1x8x128xf32> to vector<8x128xf32>
    %204 = arith.subf %201, %203 : vector<8x128xf32>
    %205 = arith.mulf %204, %204 : vector<8x128xf32>
    %c1 = arith.constant 1 : index
    %c0_78 = arith.constant 0 : index
    %c0_79 = arith.constant 0 : index
    %206 = vector.load %arg1[%c1, %c0_78, %c0_79] : memref<14x8x128xf32, #tpu.memory_space<vmem>>, vector<1x8x128xf32>
    %207 = vector.shape_cast %206 : vector<1x8x128xf32> to vector<8x128xf32>
    %c1_80 = arith.constant 1 : index
    %c0_81 = arith.constant 0 : index
    %c0_82 = arith.constant 0 : index
    %208 = vector.load %arg2[%c1_80, %c0_81, %c0_82] : memref<9x8x128xf32, #tpu.memory_space<vmem>>, vector<1x8x128xf32>
    %209 = vector.shape_cast %208 : vector<1x8x128xf32> to vector<8x128xf32>
    %210 = arith.subf %207, %209 : vector<8x128xf32>
    %211 = arith.mulf %210, %210 : vector<8x128xf32>
    %212 = arith.addf %205, %211 : vector<8x128xf32>
    %c2 = arith.constant 2 : index
    %c0_83 = arith.constant 0 : index
    %c0_84 = arith.constant 0 : index
    %213 = vector.load %arg1[%c2, %c0_83, %c0_84] : memref<14x8x128xf32, #tpu.memory_space<vmem>>, vector<1x8x128xf32>
    %214 = vector.shape_cast %213 : vector<1x8x128xf32> to vector<8x128xf32>
    %c2_85 = arith.constant 2 : index
    %c0_86 = arith.constant 0 : index
    %c0_87 = arith.constant 0 : index
    %215 = vector.load %arg2[%c2_85, %c0_86, %c0_87] : memref<9x8x128xf32, #tpu.memory_space<vmem>>, vector<1x8x128xf32>
    %216 = vector.shape_cast %215 : vector<1x8x128xf32> to vector<8x128xf32>
    %217 = arith.subf %214, %216 : vector<8x128xf32>
    %218 = arith.mulf %217, %217 : vector<8x128xf32>
    %219 = arith.addf %212, %218 : vector<8x128xf32>
    %c3 = arith.constant 3 : index
    %c0_88 = arith.constant 0 : index
    %c0_89 = arith.constant 0 : index
    %220 = vector.load %arg1[%c3, %c0_88, %c0_89] : memref<14x8x128xf32, #tpu.memory_space<vmem>>, vector<1x8x128xf32>
    %221 = vector.shape_cast %220 : vector<1x8x128xf32> to vector<8x128xf32>
    %c3_90 = arith.constant 3 : index
    %c0_91 = arith.constant 0 : index
    %c0_92 = arith.constant 0 : index
    %222 = vector.load %arg2[%c3_90, %c0_91, %c0_92] : memref<9x8x128xf32, #tpu.memory_space<vmem>>, vector<1x8x128xf32>
    %223 = vector.shape_cast %222 : vector<1x8x128xf32> to vector<8x128xf32>
    %224 = arith.subf %221, %223 : vector<8x128xf32>
    %225 = arith.mulf %224, %224 : vector<8x128xf32>
    %226 = arith.addf %219, %225 : vector<8x128xf32>
    %cst_93 = arith.constant 5.000000e-01 : f32
    %227 = vector.broadcast %cst_93 : f32 to vector<8x128xf32>
    %228 = arith.mulf %227, %184 : vector<8x128xf32>
    %229 = arith.addf %179, %228 : vector<8x128xf32>
    %230 = arith.mulf %229, %199 : vector<8x128xf32>
    %cst_94 = arith.constant 5.000000e+00 : f32
    %231 = vector.broadcast %cst_94 : f32 to vector<8x128xf32>
    %232 = arith.mulf %231, %197 : vector<8x128xf32>
    %233 = arith.addf %232, %226 : vector<8x128xf32>
    %234 = arith.mulf %179, %233 : vector<8x128xf32>
    %235 = arith.addf %230, %234 : vector<8x128xf32>
    %c0_95 = arith.constant 0 : index
    %c0_96 = arith.constant 0 : index
    %c0_97 = arith.constant 0 : index
    %236 = vector.load %arg3[%c0_95, %c0_96, %c0_97] : memref<1x8x128xf32, #tpu.memory_space<vmem>>, vector<1x8x128xf32>
    %237 = vector.shape_cast %236 : vector<1x8x128xf32> to vector<8x128xf32>
    %238 = vector.shape_cast %235 : vector<8x128xf32> to vector<1x8x128xf32>
    tpu.vector_store %arg3[%c0_95, %c0_96, %c0_97], %238 {strides = array<i32>} : memref<1x8x128xf32, #tpu.memory_space<vmem>>, vector<1x8x128xf32>,
    return
  }
  func.func @transform_0(%arg0: i32) -> (i32, i32, i32) {
    %c0_i32 = arith.constant 0 : i32
    %c0_i32_0 = arith.constant 0 : i32
    %c0_i32_1 = arith.constant 0 : i32
    return %c0_i32, %arg0, %c0_i32_0 : i32, i32, i32
  }
  func.func @transform_1(%arg0: i32) -> (i32, i32, i32) {
    %c0_i32 = arith.constant 0 : i32
    %c0_i32_0 = arith.constant 0 : i32
    %c0_i32_1 = arith.constant 0 : i32
    return %c0_i32, %arg0, %c0_i32_0 : i32, i32, i32
  }
  func.func @transform_2(%arg0: i32) -> (i32, i32, i32) {
    %c0_i32 = arith.constant 0 : i32
    %c0_i32_0 = arith.constant 0 : i32
    %c0_i32_1 = arith.constant 0 : i32
    return %arg0, %c0_i32, %c0_i32_0 : i32, i32, i32
  }
}

</mosaic_0001>

<bundles_post_ra>
// kernel: tpu_custom_call.1
= control target key start
LH: loop header
LB: loop body
LE: loop exit
PB: predicated region body
PF: predicated region fallthrough
CT: control target
= control target key end

     0   :  { %7 = vsyncpa [#allocation3], 0  ;;  %s447_s0 = inlined_call_operand.hbm [shape: f32[14,8,128], index: 0, kind: input, shape index: {}]   ;;  %s448_s1 = inlined_call_operand.hbm [shape: f32[9,8,128], index: 1, kind: input, shape index: {}]   ;;  %s449_s2 = inlined_call_operand.hbm [shape: f32[1,8,128], index: 2, kind: output, shape index: {}]  }
   0x1   :  { %8 = vsyncpa [#allocation6], 0 }
   0x2   :  { %9 = vsyncpa [#allocation4], 0  ;;  %s323_s9 = smov [#allocation2]   ;;  %s251_s13 = scalar_lea.hbm %s447_s0, 1792 }
   0x3   :  { %s15_s10 = sshll.u32 %s323_s9, 4  ;;  %p252_p0 = scmp.ne.s32.totalorder %s447_s0, %s251_s13  ;;  %s16_s10 = int_to_ptr.vmem [resolvable:$true] %s15_s10 }
   0x4   :  { %p255_p1 = scmp.lt.u32.totalorder %s251_s13, %s447_s0 }
   0x6   :  { %p257_p2 = pnand %p255_p1, %p252_p0 }
   0x8   :  { %260 = shalt.err (!%p257_p2)
}
   0x9   :  { %s261_s18 = scalar_lea.vmem %s16_s10, 1792  ;;  %p266_p4 = scmp.lt.s32.totalorder %s16_s10, %s16_s10 }
   0xa   :  { %p262_p3 = scmp.ne.s32.totalorder %s16_s10, %s261_s18  ;;  %p267_p5 = scmp.lt.s32.totalorder %s261_s18, %s261_s18 }
   0xc   :  { %p268_p6 = por %p267_p5, %p266_p4 }
   0xe   :  { %p269_p7 = pnand %p268_p6, %p262_p3 }
  0x10   :  { %272 = shalt.err (!%p269_p7)
}
  0x11   :  { %s324_s19 = smov 128   ;;  %s325_s20 = smov 8  }
  0x12   :  { %21 = dma.hbm_to_vmem [thread:$0]  %s447_s0, 1792, %s16_s10, [#allocation3], %s324_s19, %s324_s19, %s325_s20  }
  0x13   :  { %s326_s23 = smov [#allocation5]   ;;  %s273_s27 = scalar_lea.hbm %s448_s1, 1152 }
  0x14   :  { %s27_s24 = sshll.u32 %s326_s23, 4  ;;  %p274_p8 = scmp.ne.s32.totalorder %s448_s1, %s273_s27  ;;  %s28_s24 = int_to_ptr.vmem [resolvable:$true] %s27_s24 }
  0x15   :  { %p277_p9 = scmp.lt.u32.totalorder %s273_s27, %s448_s1 }
  0x17   :  { %p279_p10 = pnand %p277_p9, %p274_p8 }
  0x19   :  { %282 = shalt.err (!%p279_p10)
}
  0x1a   :  { %s283_s4 = scalar_lea.vmem %s28_s24, 1152  ;;  %p288_p12 = scmp.lt.s32.totalorder %s28_s24, %s28_s24 }
  0x1b   :  { %p284_p11 = scmp.ne.s32.totalorder %s28_s24, %s283_s4  ;;  %p289_p13 = scmp.lt.s32.totalorder %s283_s4, %s283_s4 }
  0x1d   :  { %p290_p0 = por %p289_p13, %p288_p12 }
  0x1f   :  { %p291_p1 = pnand %p290_p0, %p284_p11 }
  0x21   :  { %294 = shalt.err (!%p291_p1)
}
  0x22   :  { %33 = dma.hbm_to_vmem [thread:$0]  %s448_s1, 1152, %s28_s24, [#allocation6], %s324_s19, %s324_s19, %s325_s20  }
  0x23   :  { %317 = dma.done.wait [#allocation3], 1792  }
  0x24   :  { %318 = vsyncadd [#allocation3], 4294965504 }
  0x25   :  { %319 = dma.done.wait [#allocation6], 1152  }
  0x26   :  { %320 = vsyncadd [#allocation6], 4294966144  ;;  %v41_v0 = vlaneseq  ;;  %v372_v7 = vld [vmem:[#allocation5 + $0x38] sm:$0xff]  ;;  %v374_v8 = vld [vmem:[#allocation5 + $0x40] sm:$0xff]  ;;  %s328_s1 = smov [#allocation7]  }
  0x27   :  { %v376_v9 = vld [vmem:[#allocation5 + $0x28] sm:$0xff]  ;;  %v71_v10 = vmul.f32 64.0, %v372_v7  ;;  %v72_v11 = vmul.f32 64.0, %v374_v8  ;;  %v380_v12 = vld [vmem:[#allocation2 + $0x28] sm:$0xff]  ;;  %v384_v16 = vld [vmem:[#allocation5 + $0x30] sm:$0xff]  ;;  %s232_s6 = sshll.u32 %s328_s1, 4  ;;  %s233_s6 = int_to_ptr.vmem [resolvable:$true] %s232_s6 }
  0x28   :  { %v42_v1 = vshrl.u32 %v41_v0, 7  ;;  %v44_v2 = vand.u32 127, %v41_v0  ;;  %v382_v13 = vld [vmem:[#allocation2 + $0x38] sm:$0xff]  ;;  %v386_v17 = vld [vmem:[#allocation2 + $0x40] sm:$0xff]  ;;  %v389_v19 = vld [vmem:[#allocation2 + $0x50] sm:$0xff]  ;;  %s295_s7 = scalar_lea.vmem %s233_s6, 128  ;;  %p300_p3 = scmp.lt.s32.totalorder %s233_s6, %s233_s6 }
  0x29   :  { %v98_v18 = vmul.f32 64.0, %v382_v13  ;;  %v73_v20 = vmul.f32 0.5, %v71_v10  ;;  %v75_v21 = vmul.f32 0.5, %v72_v11  ;;  %v391_v22 = vld [vmem:[#allocation2 + $0x30] sm:$0xff]  ;;  %v99_v23 = vmul.f32 64.0, %v386_v17  ;;  %v394_v24 = vld [vmem:[#allocation2 + $0x60] sm:$0xff]  ;;  %p296_p2 = scmp.ne.s32.totalorder %s233_s6, %s295_s7  ;;  %p301_p4 = scmp.lt.s32.totalorder %s295_s7, %s295_s7 }
  0x2a   :  { %v45_v3 = vmul.u32 128, %v42_v1  ;;  %v396_v25 = vld [vmem:[#allocation2 + $0x68] sm:$0xff]  ;;  %v400_v30 = vld [vmem:[#allocation2 + $0x58] sm:$0xff]  ;;  %v137_v33 = vmul.f32 64.0, %v394_v24 }
  0x2b   :  { %v100_v29 = vmul.f32 0.5, %v98_v18  ;;  %v102_v31 = vmul.f32 0.5, %v99_v23  ;;  %v138_v34 = vmul.f32 64.0, %v396_v25  ;;  %p302_p5 = por %p301_p4, %p300_p3 }
  0x2c   :  { %v368_v4 = vadd.s32 %v45_v3, %v44_v2  ;;  %v139_v41 = vmul.f32 0.5, %v137_v33 }
  0x2d   :  { %v141_v42 = vmul.f32 0.5, %v138_v34  ;;  %p303_p6 = pnand %p302_p5, %p296_p2 }
  0x2e   :  { %v52_v5 = vand.u32 3, %v368_v4  ;;  %v54_v6 = vshra.s32 %v368_v4, 2  ;;  %vm49_vm0 = vcmp.lt.s32.totalorder %v368_v4, 32 }
  0x30   :  { %v53_v14 = vcvt.s32.f32 %v52_v5  ;;  %v55_v15 = vand.u32 3, %v54_v6 }
  0x32   :  { %v56_v26 = vcvt.s32.f32 %v55_v15  ;;  %v67_v27 = vadd.f32 %v376_v9, %v53_v14  ;;  %v94_v28 = vadd.f32 %v380_v12, %v53_v14  ;;  %v133_v32 = vadd.f32 %v389_v19, %v53_v14 }
  0x34   :  { %v68_v35 = vmul.f32 16.0, %v67_v27  ;;  %v69_v36 = vadd.f32 %v384_v16, %v56_v26  ;;  %v95_v37 = vmul.f32 16.0, %v94_v28  ;;  %v96_v38 = vadd.f32 %v391_v22, %v56_v26 }
  0x35   :  { %v134_v39 = vmul.f32 16.0, %v133_v32  ;;  %v135_v40 = vadd.f32 %v400_v30, %v56_v26 }
  0x36   :  { %v70_v43 = vmul.f32 16.0, %v69_v36  ;;  %v74_v44 = vsub.f32 %v68_v35, %v73_v20  ;;  %v77_v45 = vadd.f32 %v73_v20, %v68_v35  ;;  %v97_v46 = vmul.f32 16.0, %v96_v38 }
  0x37   :  { %v101_v47 = vsub.f32 %v95_v37, %v100_v29  ;;  %v104_v48 = vadd.f32 %v100_v29, %v95_v37  ;;  %v136_v49 = vmul.f32 16.0, %v135_v40  ;;  %v140_v50 = vsub.f32 %v134_v39, %v139_v41 }
  0x38   :  { %v76_v51 = vsub.f32 %v70_v43, %v75_v21  ;;  %v78_v52 = vadd.f32 %v75_v21, %v70_v43  ;;  %v79_v53 = vsub.f32 %v77_v45, %v74_v44  ;;  %v103_v54 = vsub.f32 %v97_v46, %v102_v31  ;;  %v198_v43 = vld [vmem:[#allocation2 + $0x8] sm:$0xff] }
  0x39   :  { %v105_v55 = vadd.f32 %v102_v31, %v97_v46  ;;  %v106_v56 = vmax.f32 %v101_v47, %v74_v44  ;;  %v108_v57 = vmin.f32 %v104_v48, %v77_v45  ;;  %v115_v58 = vsub.f32 %v104_v48, %v101_v47 }
  0x3a   :  { %v80_v59 = vmax.f32 %v79_v53, 0.0  ;;  %v81_v60 = vsub.f32 %v78_v52, %v76_v51  ;;  %v107_v61 = vmax.f32 %v103_v54, %v76_v51  ;;  %v142_v62 = vsub.f32 %v136_v49, %v141_v42 }
  0x3b   :  { %v109_v63 = vmin.f32 %v105_v55, %v78_v52  ;;  %v110_v0 = vsub.f32 %v108_v57, %v106_v56  ;;  %v116_v1 = vmax.f32 %v115_v58, 0.0  ;;  %v117_v2 = vsub.f32 %v105_v55, %v103_v54 }
  0x3c   :  { %v82_v3 = vmax.f32 %v81_v60, 0.0  ;;  %v143_v5 = vadd.f32 %v139_v41, %v134_v39  ;;  %v144_v6 = vadd.f32 %v141_v42, %v136_v49  ;;  %v145_v10 = vmax.f32 %v140_v50, %v74_v44  ;;  %v193_v39 = vld [vmem:[#allocation2] sm:$0xff]  ;;  %v194_v42 = vld [vmem:[#allocation5] sm:$0xff]  ;;  %v200_v44 = vld [vmem:[#allocation5 + $0x8] sm:$0xff] }
  0x3d   :  { %v111_v11 = vmax.f32 %v110_v0, 0.0  ;;  %v112_v14 = vsub.f32 %v109_v63, %v107_v61  ;;  %v118_v15 = vmax.f32 %v117_v2, 0.0  ;;  %v146_v18 = vmax.f32 %v142_v62, %v76_v51  ;;  %v205_v51 = vld [vmem:[#allocation2 + $0x10] sm:$0xff]  ;;  %v214_v63 = vld [vmem:[#allocation5 + $0x18] sm:$0xff]  ;;  %v85_v2 = vld [vmem:[#allocation2 + $0x20] sm:$0xff] }
  0x3e   :  { %v83_v20 = vmul.f32 %v82_v3, %v80_v59  ;;  %v147_v21 = vmin.f32 %v143_v5, %v77_v45  ;;  %v148_v23 = vmin.f32 %v144_v6, %v78_v52  ;;  %v154_v26 = vsub.f32 %v143_v5, %v140_v50  ;;  %v58_v45 = vld [vmem:[#allocation5 + $0x20] sm:$0xff]  ;;  %v207_v52 = vld [vmem:[#allocation5 + $0x10] sm:$0xff]  ;;  %v124_v3 = vld [vmem:[#allocation2 + $0x48] sm:$0xff] }
  0x3f   :  { %v113_v27 = vmax.f32 %v112_v14, 0.0  ;;  %v119_v28 = vmul.f32 %v118_v15, %v116_v1  ;;  %v156_v29 = vsub.f32 %v144_v6, %v142_v62  ;;  %v195_v49 = vsub.f32 %v193_v39, %v194_v42  ;;  %v212_v62 = vld [vmem:[#allocation2 + $0x18] sm:$0xff] }
  0x40   :  { %v149_v31 = vsub.f32 %v147_v21, %v145_v10  ;;  %v151_v32 = vsub.f32 %v148_v23, %v146_v18  ;;  %v155_v33 = vmax.f32 %v154_v26, 0.0  ;;  %v201_v50 = vsub.f32 %v198_v43, %v200_v44 }
  0x41   :  { %v114_v34 = vmul.f32 %v113_v27, %v111_v11  ;;  %v120_v35 = vadd.f32 %v119_v28, %v83_v20  ;;  %v157_v36 = vmax.f32 %v156_v29, 0.0  ;;  %vm174_vm1 = vcmp.eq.f32.partialorder %v58_v45, 0.0 }
  0x42   :  { %v150_v37 = vmax.f32 %v149_v31, 0.0  ;;  %v152_v38 = vmax.f32 %v151_v32, 0.0  ;;  %vm170_vm2 = vcmp.eq.f32.partialorder %v58_v45, 1.0  ;;  %v208_v56 = vsub.f32 %v205_v51, %v207_v52 }
  0x43   :  { %v121_v40 = vsub.f32 %v120_v35, %v114_v34  ;;  %v158_v41 = vmul.f32 %v157_v36, %v155_v33  ;;  %v327_v57 = vmov 0.0   ;;  %v196_v60 = vmul.f32 %v195_v49, %v195_v49 }
  0x44   :  { %v153_v46 = vmul.f32 %v152_v38, %v150_v37  ;;  %v242_v58 = vsel %vm49_vm0, 1.0, %v327_v57  ;;  %v244_v59 = vsel %vm174_vm1, 1.0, %v327_v57  ;;  %v202_v61 = vmul.f32 %v201_v50, %v201_v50 }
  0x45   :  { %v122_v47 = vmax.f32 %v121_v40, 1e-10  ;;  %v159_v48 = vadd.f32 %v158_v41, %v83_v20  ;;  %v243_v1 = vsel %vm170_vm2, 1.0, %v327_v57  ;;  %v177_v4 = vmul.f32 %v244_v59, %v242_v58 }
  0x46   :  { %v209_v6 = vmul.f32 %v208_v56, %v208_v56  ;;  %v215_v10 = vsub.f32 %v212_v62, %v214_v63  ;;  %v203_v18 = vadd.f32 %v202_v61, %v196_v60 }
  0x47   :  { %v160_v53 = vsub.f32 %v159_v48, %v153_v46  ;;  %v162_v55 = vmul.f32 %v153_v46, %v122_v47  ;;  %v218_v29 = vmul.f32 0.5, %v177_v4 }
  0x48   :  { %v216_v28 = vmul.f32 %v215_v10, %v215_v10 }
  0x49   :  { %v161_v54 = vmax.f32 %v160_v53, 1e-10 }
  0x4b   :  { %v163_v0 = vmul.f32 %v161_v54, %v114_v34 }
  0x4d   :  { %vm409_vm3 = vcmp.gt.f32.partialorder %v162_v55, %v163_v0 }
  0x4e   :  { %v166_v11 = vsel %vm409_vm3, %v389_v19, %v380_v12  ;;  %v167_v14 = vsel %vm409_vm3, %v400_v30, %v391_v22  ;;  %v168_v15 = vsel %vm409_vm3, %v394_v24, %v382_v13  ;;  %v169_v20 = vsel %vm409_vm3, %v396_v25, %v386_v17 }
  0x4f   :  { %v178_v21 = vsub.f32 %v376_v9, %v166_v11  ;;  %v180_v12 = vsub.f32 %v384_v16, %v167_v14  ;;  %v183_v19 = vand.u32 2147483647, %v168_v15  ;;  %v165_v23 = vsel %vm409_vm3, %v124_v3, %v85_v2 }
  0x50   :  { %v187_v22 = vand.u32 2147483647, %v169_v20  ;;  %v173_v13 = vmul.f32 %v243_v1, %v242_v58  ;;  %v191_v25 = vsub.f32 %v165_v23, %v58_v45  ;;  %v210_v9 = vadd.f32 %v209_v6, %v203_v18 }
  0x51   :  { %v179_v30 = vmul.f32 %v178_v21, %v178_v21  ;;  %v181_v26 = vmul.f32 %v180_v12, %v180_v12  ;;  %v184_v27 = vsub.f32 %v372_v7, %v183_v19 }
  0x52   :  { %v188_v24 = vsub.f32 %v374_v8, %v187_v22  ;;  %v192_v34 = vmul.f32 %v191_v25, %v191_v25  ;;  %v217_v35 = vadd.f32 %v216_v28, %v210_v9  ;;  %v219_v36 = vadd.f32 %v218_v29, %v173_v13 }
  0x53   :  { %v182_v31 = vadd.f32 %v181_v26, %v179_v30  ;;  %v185_v17 = vmul.f32 %v184_v27, %v184_v27 }
  0x54   :  { %v189_v32 = vmul.f32 %v188_v24, %v188_v24  ;;  %v220_v38 = vmul.f32 %v219_v36, %v192_v34 }
  0x55   :  { %v186_v16 = vadd.f32 %v185_v17, %v182_v31 }
  0x57   :  { %v190_v33 = vadd.f32 %v189_v32, %v186_v16 }
  0x59   :  { %v221_v37 = vmul.f32 5.0, %v190_v33 }
  0x5b   :  { %v222_v39 = vadd.f32 %v221_v37, %v217_v35 }
  0x5d   :  { %v223_v7 = vmul.f32 %v222_v39, %v173_v13 }
  0x5f   :  { %v224_v40 = vadd.f32 %v223_v7, %v220_v38 }
  0x61   :  { %225 = vst [vmem:[#allocation7] sm:$0xff] %v224_v40 }
  0x62   :  { %306 = shalt.err (!%p303_p6)
}
  0x63   :  { %s307_s10 = scalar_lea.hbm %s449_s2, 128 }
  0x64   :  { %p308_p7 = scmp.ne.s32.totalorder %s449_s2, %s307_s10  ;;  %p311_p8 = scmp.lt.u32.totalorder %s307_s10, %s449_s2 }
  0x66   :  { %p313_p9 = pnand %p311_p8, %p308_p7 }
  0x68   :  { %316 = shalt.err (!%p313_p9)
}
  0x69   :  { %235 = dma.vmem_to_hbm [thread:$0]  %s233_s6, 128, %s449_s2, [#allocation4]  }
  0x6a   :  { %321 = dma.done.wait [#allocation4], 128  }
  0x6b   :  { %322 = vsyncadd [#allocation4], 4294967168 }
  0x6c   :  { %239 = vsyncpa [#allocation3], 1 }
  0x6d   :  { %240 = vsyncpa [#allocation6], 1 }
  0x6e   :  { %241 = vsyncpa [#allocation4], 1 }

</bundles_post_ra>
